<compile_context>
chip_gen: v7x
topology: tpu7x:2x2x1
jax: 0.10.0
libtpu: 0.0.40
codegen_flags: <defaults>
</compile_context>

<pallas_src>
import functools

import jax
import jax.numpy as jnp
from jax.experimental import pallas as pl
from jax.experimental.pallas import tpu as pltpu

LANES = 128
SUBLANES = 8
SMOOTH = 1.0


def _device_kind() -> str:
    try:
        return jax.devices()[0].device_kind.lower()
    except Exception:
        return ""


_KIND = _device_kind()

# v7x has 2 TensorCores per chip worth splitting over; v5e/v6e have a single
# TC, where a forced 2-way split only duplicates block DMAs and forces masking.
NCORES = 2 if "v7" in _KIND else 1

# Tile sizing: pipeline VMEM = 2 inputs x 2 buffers x row_tile x 128 x 4B.
#   v5e  (~0.82 TB/s HBM): 4096 rows ->  8 MiB pipeline, step >> 0.35us overhead.
#   v6e/v7x (1.4/3.2 TB/s): 8192 rows -> 16 MiB pipeline, overhead <10%/step.
DEFAULT_ROW_TILE = 4096 if "v5" in _KIND else 8192

# Raise the scoped-VMEM limit (defaults are 16-32 MiB) rather than shrinking
# the tile to fit it; 48 MiB is below physical VMEM on every generation
# (64 MiB/TC on v7x, 128 MiB on v5e/v6e) and leaves headroom over the
# ~25-35 MiB actually used at the largest tile.
VMEM_LIMIT_BYTES = 48 * 1024 * 1024


def _dice_partials_kernel(t_ref, p_ref, o_ref, acc_prod, acc_sum, *,
                          inner, num_blocks, block_rows, rows_padded,
                          mask_from, need_mask):
    """Per-core lane partials of sum(t*p) and sum(t+p) over its row blocks."""
    c = pl.program_id(0)   # core / outer split ("parallel")
    i = pl.program_id(1)   # row-block step within this core ("arbitrary")

    @pl.when(i == 0)
    def _():
        acc_prod[...] = jnp.zeros_like(acc_prod)
        acc_sum[...] = jnp.zeros_like(acc_sum)

    def _accumulate(t, p):
        # Lane-wise partial accumulators: VPU mul/add + one sublane reduce per
        # step (XLU slot, free slack in an HBM-bound kernel).
        acc_prod[...] += jnp.sum(t * p, axis=0, keepdims=True)
        acc_sum[...] += jnp.sum(t + p, axis=0, keepdims=True)

    def _plain():
        _accumulate(t_ref[...].astype(jnp.float32),
                    p_ref[...].astype(jnp.float32))

    if need_mask:
        block_idx = c * inner + i

        def _masked():
            # Ragged edge block (Pallas pads it with unspecified rows) or
            # clamped duplicate block (would double count): zero invalid rows.
            local_row = jax.lax.broadcasted_iota(
                jnp.int32, (block_rows, LANES), 0)
            valid = block_idx * block_rows + local_row < rows_padded
            _accumulate(jnp.where(valid, t_ref[...].astype(jnp.float32), 0.0),
                        jnp.where(valid, p_ref[...].astype(jnp.float32), 0.0))

        is_plain = block_idx < mask_from
        pl.when(is_plain)(_plain)
        pl.when(jnp.logical_not(is_plain))(_masked)
    else:
        _plain()

    @pl.when(i == pl.num_programs(1) - 1)
    def _():
        o_ref[0, 0:1, :] = acc_prod[...]
        o_ref[0, 1:2, :] = acc_sum[...]


def dice_loss_pallas(targets: jax.Array, preds: jax.Array,
                     row_tile: int = None, ncores: int = None) -> jax.Array:
    """Dice loss over all elements. targets/preds: same (e.g. NCHW) shape."""
    assert targets.shape == preds.shape
    row_tile = DEFAULT_ROW_TILE if row_tile is None else row_tile
    ncores = NCORES if ncores is None else ncores
    assert row_tile % SUBLANES == 0 and row_tile > 0

    n = targets.size
    rows = pl.cdiv(n, LANES)
    rows_padded = pl.cdiv(rows, SUBLANES) * SUBLANES   # keep (8,128) tiling
    pad = rows_padded * LANES - n

    def to_slab(x):
        # Native dtype, no astype.  Fast path: pure reshape.
        if pad == 0:
            return x.reshape(rows_padded, LANES)
        # Ragged tail: < 8*128 zeros; zeros contribute nothing to either sum,
        # so no in-kernel masking is needed for them.
        return jnp.pad(x.reshape(-1), (0, pad)).reshape(rows_padded, LANES)

    t2 = to_slab(targets)
    p2 = to_slab(preds)

    block_rows = min(row_tile, rows_padded)
    num_blocks = pl.cdiv(rows_padded, block_rows)
    inner = pl.cdiv(num_blocks, ncores)

    ragged_edge = num_blocks * block_rows != rows_padded   # partial last block
    has_dup = inner * ncores != num_blocks                 # clamped duplicates
    need_mask = ragged_edge or has_dup
    mask_from = num_blocks - 1 if ragged_edge else num_blocks

    def in_map(c, i):
        # Clamp duplicate blocks so they never index past the slab; the kernel
        # masks their contribution to zero.
        return (jnp.minimum(c * inner + i, num_blocks - 1), 0)

    kernel = functools.partial(
        _dice_partials_kernel, inner=inner, num_blocks=num_blocks,
        block_rows=block_rows, rows_padded=rows_padded,
        mask_from=mask_from, need_mask=need_mask)

    partials = pl.pallas_call(
        kernel,
        out_shape=jax.ShapeDtypeStruct((ncores, 2, LANES), jnp.float32),
        grid_spec=pltpu.PrefetchScalarGridSpec(
            num_scalar_prefetch=0,
            grid=(ncores, inner),
            in_specs=[
                pl.BlockSpec((block_rows, LANES), in_map),
                pl.BlockSpec((block_rows, LANES), in_map),
            ],
            out_specs=pl.BlockSpec((1, 2, LANES), lambda c, i: (c, 0, 0)),
            scratch_shapes=[
                pltpu.VMEM((1, LANES), jnp.float32),  # lane partials of t*p
                pltpu.VMEM((1, LANES), jnp.float32),  # lane partials of t+p
            ],
        ),
        compiler_params=pltpu.CompilerParams(
            # TODO(synk): on v7x, confirm with xprof that the leading
            # "parallel" axis is actually sharded across the 2 TensorCores;
            # if not, switch that axis to pltpu.CORE_PARALLEL.
            dimension_semantics=("parallel", "arbitrary"),
            vmem_limit_bytes=VMEM_LIMIT_BYTES),
    )(t2, p2)

    # Tiny epilogue: combine per-core lane partials and apply the dice formula.
    inter = jnp.sum(partials[:, 0, :])
    denom = jnp.sum(partials[:, 1, :])
    return 1.0 - (2.0 * inter + SMOOTH) / (denom + SMOOTH)


def dice_loss_ref(targets, preds):
    t = targets.astype(jnp.float32).reshape(-1)
    p = preds.astype(jnp.float32).reshape(-1)
    inter = jnp.sum(t * p)
    return 1.0 - (2.0 * inter + SMOOTH) / (jnp.sum(t) + jnp.sum(p) + SMOOTH)


if __name__ == "__main__":
    key = jax.random.PRNGKey(0)
    k1, k2, k3, k4 = jax.random.split(key, 4)

    # NCHW segmentation-style tensors implied by the module.
    shape = (2, 4, 16, 16)
    targets = (jax.random.uniform(k1, shape) > 0.5).astype(jnp.float32)
    preds = jax.random.uniform(k2, shape, dtype=jnp.float32)
    ref = dice_loss_ref(targets, preds)

    def check(out, expect):
        jax.block_until_ready(out)
        assert jnp.allclose(out, expect, atol=1e-5, rtol=1e-5), (out, expect)

    # 1) Defaults (chip-sized tile, chip-aware core split): single-block path.
    check(dice_loss_pallas(targets, preds), ref)
    # 2) Multi-block single-core streaming path.
    check(dice_loss_pallas(targets, preds, row_tile=8), ref)
    # 3) Explicit 2-way core split, blocks divide evenly (no masking at all).
    check(dice_loss_pallas(targets, preds, row_tile=8, ncores=2), ref)

    # Ragged size (n % 128 != 0): lane/row tail zero-padded in the wrapper.
    shape3 = (3, 5, 17, 13)
    t3 = (jax.random.uniform(k3, shape3) > 0.5).astype(jnp.float32)
    p3 = jax.random.uniform(k4, shape3, dtype=jnp.float32)
    ref3 = dice_loss_ref(t3, p3)

    # 4) Zero-padded tail, evenly dividing blocks (still no in-kernel mask).
    check(dice_loss_pallas(t3, p3, row_tile=8), ref3)
    # 5) Ragged edge block (block_rows does not divide rows): gated mask path.
    check(dice_loss_pallas(t3, p3, row_tile=24), ref3)
    # 6) Clamped duplicate block (odd block count over 2 cores): gated skip.
    check(dice_loss_pallas(t3, p3, row_tile=32, ncores=2), ref3)

    # TODO(synk): the torch module's detach/cpu/numpy round-trip and
    # requires_grad plumbing is host-side autograd glue with no kernel
    # equivalent.
    print("KERNEL_OK")
</pallas_src>

<mosaic_0001>
module attributes {stable_mosaic.version = 11 : i64} {
  func.func @_dice_partials_kernel(%arg0: i32, %arg1: i32, %arg2: memref<16x128xf32, #tpu.memory_space<vmem>>, %arg3: memref<16x128xf32, #tpu.memory_space<vmem>>, %arg4: memref<1x2x128xf32, #tpu.memory_space<vmem>>, %arg5: memref<1x128xf32, #tpu.memory_space<vmem>>, %arg6: memref<1x128xf32, #tpu.memory_space<vmem>>) attributes {dimension_semantics = [#tpu.dimension_semantics<parallel>, #tpu.dimension_semantics<arbitrary>], iteration_bounds = array<i64: 1, 1>, scalar_prefetch = 0 : i64, scratch_operands = 2 : i64, tpu.core_type = #tpu.core_type<tc>, window_params = [{transform_indices = @transform_0, window_bounds = array<i64: 16, 128>}, {transform_indices = @transform_1, window_bounds = array<i64: 16, 128>}, {transform_indices = @transform_2, window_bounds = array<i64: 1, 2, 128>}]} {
    %c0_i32 = arith.constant 0 : i32
    %0 = arith.cmpi eq, %arg1, %c0_i32 : i32
    %1 = arith.extui %0 : i1 to i32
    %c0_i32_0 = arith.constant 0 : i32
    %2 = arith.cmpi ne, %1, %c0_i32_0 : i32
    scf.if %2 {
      %cst_15 = arith.constant 0.000000e+00 : f32
      %20 = vector.broadcast %cst_15 : f32 to vector<1x128xf32>
      %c0_16 = arith.constant 0 : index
      %c0_17 = arith.constant 0 : index
      %21 = vector.load %arg5[%c0_16, %c0_17] : memref<1x128xf32, #tpu.memory_space<vmem>>, vector<1x128xf32>
      tpu.vector_store %arg5[%c0_16, %c0_17], %20 {strides = array<i32>} : memref<1x128xf32, #tpu.memory_space<vmem>>, vector<1x128xf32>,
      %cst_18 = arith.constant 0.000000e+00 : f32
      %22 = vector.broadcast %cst_18 : f32 to vector<1x128xf32>
      %c0_19 = arith.constant 0 : index
      %c0_20 = arith.constant 0 : index
      %23 = vector.load %arg6[%c0_19, %c0_20] : memref<1x128xf32, #tpu.memory_space<vmem>>, vector<1x128xf32>
      tpu.vector_store %arg6[%c0_19, %c0_20], %22 {strides = array<i32>} : memref<1x128xf32, #tpu.memory_space<vmem>>, vector<1x128xf32>,
    } else {
    }
    %c0 = arith.constant 0 : index
    %c0_1 = arith.constant 0 : index
    %3 = vector.load %arg2[%c0, %c0_1] : memref<16x128xf32, #tpu.memory_space<vmem>>, vector<16x128xf32>
    %c0_2 = arith.constant 0 : index
    %c0_3 = arith.constant 0 : index
    %4 = vector.load %arg3[%c0_2, %c0_3] : memref<16x128xf32, #tpu.memory_space<vmem>>, vector<16x128xf32>
    %c0_4 = arith.constant 0 : index
    %c0_5 = arith.constant 0 : index
    %5 = vector.load %arg5[%c0_4, %c0_5] : memref<1x128xf32, #tpu.memory_space<vmem>>, vector<1x128xf32>
    %6 = arith.mulf %3, %4 : vector<16x128xf32>
    %cst = arith.constant dense<0.000000e+00> : vector<128xf32>
    %7 = vector.multi_reduction <add>, %6, %cst [0] : vector<16x128xf32> to vector<128xf32>
    %8 = vector.shape_cast %7 : vector<128xf32> to vector<1x128xf32>
    %9 = arith.addf %5, %8 : vector<1x128xf32>
    %c0_6 = arith.constant 0 : index
    %c0_7 = arith.constant 0 : index
    %10 = vector.load %arg5[%c0_6, %c0_7] : memref<1x128xf32, #tpu.memory_space<vmem>>, vector<1x128xf32>
    tpu.vector_store %arg5[%c0_6, %c0_7], %9 {strides = array<i32>} : memref<1x128xf32, #tpu.memory_space<vmem>>, vector<1x128xf32>,
    %c0_8 = arith.constant 0 : index
    %c0_9 = arith.constant 0 : index
    %11 = vector.load %arg6[%c0_8, %c0_9] : memref<1x128xf32, #tpu.memory_space<vmem>>, vector<1x128xf32>
    %12 = arith.addf %3, %4 : vector<16x128xf32>
    %cst_10 = arith.constant dense<0.000000e+00> : vector<128xf32>
    %13 = vector.multi_reduction <add>, %12, %cst_10 [0] : vector<16x128xf32> to vector<128xf32>
    %14 = vector.shape_cast %13 : vector<128xf32> to vector<1x128xf32>
    %15 = arith.addf %11, %14 : vector<1x128xf32>
    %c0_11 = arith.constant 0 : index
    %c0_12 = arith.constant 0 : index
    %16 = vector.load %arg6[%c0_11, %c0_12] : memref<1x128xf32, #tpu.memory_space<vmem>>, vector<1x128xf32>
    tpu.vector_store %arg6[%c0_11, %c0_12], %15 {strides = array<i32>} : memref<1x128xf32, #tpu.memory_space<vmem>>, vector<1x128xf32>,
    %c0_i32_13 = arith.constant 0 : i32
    %17 = arith.cmpi eq, %arg1, %c0_i32_13 : i32
    %18 = arith.extui %17 : i1 to i32
    %c0_i32_14 = arith.constant 0 : i32
    %19 = arith.cmpi ne, %18, %c0_i32_14 : i32
    scf.if %19 {
      %c0_15 = arith.constant 0 : index
      %c0_16 = arith.constant 0 : index
      %20 = vector.load %arg5[%c0_15, %c0_16] : memref<1x128xf32, #tpu.memory_space<vmem>>, vector<1x128xf32>
      %c0_17 = arith.constant 0 : index
      %c0_18 = arith.constant 0 : index
      %c0_19 = arith.constant 0 : index
      %21 = vector.load %arg4[%c0_17, %c0_18, %c0_19] : memref<1x2x128xf32, #tpu.memory_space<vmem>>, vector<1x1x128xf32>
      %22 = vector.shape_cast %21 : vector<1x1x128xf32> to vector<1x128xf32>
      %23 = vector.shape_cast %20 : vector<1x128xf32> to vector<1x1x128xf32>
      tpu.vector_store %arg4[%c0_17, %c0_18, %c0_19], %23 {strides = array<i32>} : memref<1x2x128xf32, #tpu.memory_space<vmem>>, vector<1x1x128xf32>,
      %c0_20 = arith.constant 0 : index
      %c0_21 = arith.constant 0 : index
      %24 = vector.load %arg6[%c0_20, %c0_21] : memref<1x128xf32, #tpu.memory_space<vmem>>, vector<1x128xf32>
      %c0_22 = arith.constant 0 : index
      %c1 = arith.constant 1 : index
      %c0_23 = arith.constant 0 : index
      %25 = vector.load %arg4[%c0_22, %c1, %c0_23] : memref<1x2x128xf32, #tpu.memory_space<vmem>>, vector<1x1x128xf32>
      %26 = vector.shape_cast %25 : vector<1x1x128xf32> to vector<1x128xf32>
      %27 = vector.shape_cast %24 : vector<1x128xf32> to vector<1x1x128xf32>
      tpu.vector_store %arg4[%c0_22, %c1, %c0_23], %27 {strides = array<i32>} : memref<1x2x128xf32, #tpu.memory_space<vmem>>, vector<1x1x128xf32>,
    } else {
    }
    return
  }
  func.func @transform_0(%arg0: i32, %arg1: i32) -> (i32, i32) {
    %c1_i32 = arith.constant 1 : i32
    %0 = arith.muli %arg0, %c1_i32 : i32
    %1 = arith.addi %0, %arg1 : i32
    %c0_i32 = arith.constant 0 : i32
    %2 = arith.minsi %1, %c0_i32 : i32
    %c0_i32_0 = arith.constant 0 : i32
    %c0_i32_1 = arith.constant 0 : i32
    return %2, %c0_i32_0 : i32, i32
  }
  func.func @transform_1(%arg0: i32, %arg1: i32) -> (i32, i32) {
    %c1_i32 = arith.constant 1 : i32
    %0 = arith.muli %arg0, %c1_i32 : i32
    %1 = arith.addi %0, %arg1 : i32
    %c0_i32 = arith.constant 0 : i32
    %2 = arith.minsi %1, %c0_i32 : i32
    %c0_i32_0 = arith.constant 0 : i32
    %c0_i32_1 = arith.constant 0 : i32
    return %2, %c0_i32_0 : i32, i32
  }
  func.func @transform_2(%arg0: i32, %arg1: i32) -> (i32, i32, i32) {
    %c0_i32 = arith.constant 0 : i32
    %c0_i32_0 = arith.constant 0 : i32
    %c0_i32_1 = arith.constant 0 : i32
    return %arg0, %c0_i32, %c0_i32_0 : i32, i32, i32
  }
}

</mosaic_0001>

<bundles_post_ra>
// kernel: tpu_custom_call.1
= control target key start
LH: loop header
LB: loop body
LE: loop exit
PB: predicated region body
PF: predicated region fallthrough
CT: control target
= control target key end

     0   :  { %7 = vsyncpa [#allocation5], 0  ;;  %s256_s0 = inlined_call_operand.hbm [shape: f32[16,128], index: 0, kind: input, shape index: {}]   ;;  %s257_s1 = inlined_call_operand.hbm [shape: f32[16,128], index: 1, kind: input, shape index: {}]   ;;  %s258_s2 = inlined_call_operand.hbm [shape: f32[1,2,128], index: 2, kind: output, shape index: {}]  }
   0x1   :  { %8 = vsyncpa [#allocation8], 0 }
   0x2   :  { %9 = vsyncpa [#allocation6], 0  ;;  %s199_s9 = smov [#allocation4]   ;;  %s127_s13 = scalar_lea.hbm %s256_s0, 256 }
   0x3   :  { %s21_s10 = sshll.u32 %s199_s9, 4  ;;  %p128_p0 = scmp.ne.s32.totalorder %s256_s0, %s127_s13  ;;  %s22_s10 = int_to_ptr.vmem [resolvable:$true] %s21_s10 }
   0x4   :  { %p131_p1 = scmp.lt.u32.totalorder %s127_s13, %s256_s0 }
   0x6   :  { %p133_p2 = pnand %p131_p1, %p128_p0 }
   0x8   :  { %136 = shalt.err (!%p133_p2)
}
   0x9   :  { %s137_s18 = scalar_lea.vmem %s22_s10, 256  ;;  %p142_p4 = scmp.lt.s32.totalorder %s22_s10, %s22_s10 }
   0xa   :  { %p138_p3 = scmp.ne.s32.totalorder %s22_s10, %s137_s18  ;;  %p143_p5 = scmp.lt.s32.totalorder %s137_s18, %s137_s18 }
   0xc   :  { %p144_p6 = por %p143_p5, %p142_p4 }
   0xe   :  { %p145_p7 = pnand %p144_p6, %p138_p3 }
  0x10   :  { %148 = shalt.err (!%p145_p7)
}
  0x11   :  { %s200_s19 = smov 128   ;;  %s201_s20 = smov 8  }
  0x12   :  { %27 = dma.hbm_to_vmem [thread:$0]  %s256_s0, 256, %s22_s10, [#allocation5], %s200_s19, %s200_s19, %s201_s20  }
  0x13   :  { %s202_s23 = smov [#allocation7]   ;;  %s149_s27 = scalar_lea.hbm %s257_s1, 256 }
  0x14   :  { %s39_s24 = sshll.u32 %s202_s23, 4  ;;  %p150_p8 = scmp.ne.s32.totalorder %s257_s1, %s149_s27  ;;  %s40_s24 = int_to_ptr.vmem [resolvable:$true] %s39_s24 }
  0x15   :  { %p153_p9 = scmp.lt.u32.totalorder %s149_s27, %s257_s1 }
  0x17   :  { %p155_p10 = pnand %p153_p9, %p150_p8 }
  0x19   :  { %158 = shalt.err (!%p155_p10)
}
  0x1a   :  { %s159_s4 = scalar_lea.vmem %s40_s24, 256  ;;  %p164_p12 = scmp.lt.s32.totalorder %s40_s24, %s40_s24 }
  0x1b   :  { %p160_p11 = scmp.ne.s32.totalorder %s40_s24, %s159_s4  ;;  %p165_p13 = scmp.lt.s32.totalorder %s159_s4, %s159_s4 }
  0x1d   :  { %p166_p0 = por %p165_p13, %p164_p12 }
  0x1f   :  { %p167_p1 = pnand %p166_p0, %p160_p11 }
  0x21   :  { %170 = shalt.err (!%p167_p1)
}
  0x22   :  { %45 = dma.hbm_to_vmem [thread:$0]  %s257_s1, 256, %s40_s24, [#allocation8], %s200_s19, %s200_s19, %s201_s20  }
  0x23   :  { %193 = dma.done.wait [#allocation5], 256  }
  0x24   :  { %194 = vsyncadd [#allocation5], 4294967040 }
  0x25   :  { %195 = dma.done.wait [#allocation8], 256  }
  0x26   :  { %196 = vsyncadd [#allocation8], 4294967040  ;;  %v203_v0 = vmov 0.0   ;;  %v66_v1 = vld [vmem:[#allocation4] sm:$0xff]  ;;  %v67_v2 = vld [vmem:[#allocation4 + $0x8] sm:$0xff]  ;;  %s204_s1 = smov [#allocation9]  }
  0x27   :  { %64 = vst [vmem:[#allocation2] sm:$0x1] %v203_v0  ;;  %65 = vst [vmem:[#allocation3] sm:$0x1] %v203_v0  ;;  %v68_v3 = vld [vmem:[#allocation7] sm:$0xff]  ;;  %v69_v4 = vld [vmem:[#allocation7 + $0x8] sm:$0xff] }
  0x28   :  { %v71_v5 = vmul.f32 %v68_v3, %v66_v1  ;;  %v83_v6 = vadd.f32 %v68_v3, %v66_v1  ;;  %v72_v7 = vmul.f32 %v69_v4, %v67_v2  ;;  %v84_v8 = vadd.f32 %v69_v4, %v67_v2  ;;  %s107_s6 = sshll.u32 %s204_s1, 4  ;;  %s108_s6 = int_to_ptr.vmem [resolvable:$true] %s107_s6 }
  0x29   :  { %s171_s7 = scalar_lea.vmem %s108_s6, 32  ;;  %p176_p3 = scmp.lt.s32.totalorder %s108_s6, %s108_s6 }
  0x2a   :  { %v73_v9 = vadd.f32 %v72_v7, %v71_v5  ;;  %v85_v10 = vadd.f32 %v84_v8, %v83_v6  ;;  %p172_p2 = scmp.ne.s32.totalorder %s108_s6, %s171_s7  ;;  %p177_p4 = scmp.lt.s32.totalorder %s171_s7, %s171_s7 }
  0x2c   :  { %v74_v11 = vrot.slane %v73_v9, 4  ;;  %v86_v12 = vrot.slane %v85_v10, 4  ;;  %p178_p5 = por %p177_p4, %p176_p3 }
  0x2e   :  { %v75_v13 = vadd.f32 %v74_v11, %v73_v9  ;;  %v87_v14 = vadd.f32 %v86_v12, %v85_v10  ;;  %v70_v21 = vld [vmem:[#allocation2] sm:$0x1]  ;;  %v82_v22 = vld [vmem:[#allocation3] sm:$0x1]  ;;  %p179_p6 = pnand %p178_p5, %p172_p2 }
  0x30   :  { %v76_v15 = vrot.slane %v75_v13, 2  ;;  %v88_v16 = vrot.slane %v87_v14, 2 }
  0x32   :  { %v77_v17 = vadd.f32 %v76_v15, %v75_v13  ;;  %v89_v18 = vadd.f32 %v88_v16, %v87_v14 }
  0x34   :  { %v78_v19 = vrot.slane %v77_v17, 1  ;;  %v90_v20 = vrot.slane %v89_v18, 1 }
  0x36   :  { %v79_v23 = vadd.f32 %v78_v19, %v77_v17  ;;  %v91_v24 = vadd.f32 %v90_v20, %v89_v18 }
  0x38   :  { %v80_v25 = vadd.f32 %v79_v23, %v70_v21  ;;  %v92_v26 = vadd.f32 %v91_v24, %v82_v22 }
  0x3a   :  { %81 = vst [vmem:[#allocation2] sm:$0x1] %v80_v25  ;;  %93 = vst [vmem:[#allocation3] sm:$0x1] %v92_v26 }
  0x41   :  { %v97_v27 = vld [vmem:[#allocation2] sm:$0x1]  ;;  %v99_v28 = vld [vmem:[#allocation3] sm:$0x1] }
  0x42   :  { %98 = vst [vmem:[#allocation9] sm:$0x1] %v97_v27  ;;  %100 = vst [vmem:[#allocation9 + $0x1] sm:$0x1] %v99_v28 }
  0x43   :  { %182 = shalt.err (!%p179_p6)
}
  0x44   :  { %s183_s10 = scalar_lea.hbm %s258_s2, 32 }
  0x45   :  { %p184_p7 = scmp.ne.s32.totalorder %s258_s2, %s183_s10  ;;  %p187_p8 = scmp.lt.u32.totalorder %s183_s10, %s258_s2 }
  0x47   :  { %p189_p9 = pnand %p187_p8, %p184_p7 }
  0x49   :  { %192 = shalt.err (!%p189_p9)
}
  0x4a   :  { %110 = dma.vmem_to_hbm [thread:$0]  %s108_s6, 32, %s258_s2, [#allocation6]  }
  0x4b   :  { %197 = dma.done.wait [#allocation6], 32  }
  0x4c   :  { %198 = vsyncadd [#allocation6], 4294967264 }
  0x4d   :  { %114 = vsyncpa [#allocation5], 1 }
  0x4e   :  { %115 = vsyncpa [#allocation8], 1 }
  0x4f   :  { %116 = vsyncpa [#allocation6], 1 }

</bundles_post_ra>
